<compile_context>
chip_gen: v7x
topology: tpu7x:2x2x1
jax: 0.10.0
libtpu: 0.0.40
codegen_flags: <defaults>
</compile_context>

<pallas_src>
import jax
import jax.numpy as jnp
import numpy as np
from jax.experimental import pallas as pl
from jax.experimental.pallas import tpu as pltpu


def _make_maxpool_kernel(H, W, H_out, W_out, KH, KW, SH, SW):
    w_span = (W_out - 1) * SW + 1
    h_span = (H_out - 1) * SH + 1

    def kernel(x_ref, out_ref, idx_ref):
        # x_ref: (W, H, T) block; T = channel tile on the lane dim, H on
        # sublanes, W on the leading (cheap-to-slice) axis.
        x = x_ref[...]
        T = x.shape[-1]

        # ---- Pass 1: reduce the KW window taps along the LEADING (W) axis.
        # rv[ow, h, t] = max_kw x[ow*SW + kw, h, t]; rk = first argmax kw.
        # Leading-axis slices need no sublane relayout.
        rv = x[0:w_span:SW]                    # (W_out, H, T)
        rk = jnp.zeros((W_out, H, T), dtype=jnp.int32)
        for kw in range(1, KW):
            v = x[kw:kw + w_span:SW]
            upd = v > rv                       # strict ">" -> first kw wins ties
            rv = jnp.where(upd, v, rv)
            rk = jnp.where(upd, jnp.int32(kw), rk)

        # ---- Pass 2: reduce the KH window taps along the sublane (H) axis,
        # on the already W-reduced intermediate (relayout volume / W/W_out).
        bv = rv[:, 0:h_span:SH, :]             # (W_out, H_out, T)
        bk = rk[:, 0:h_span:SH, :]
        bh = jnp.zeros((W_out, H_out, T), dtype=jnp.int32)
        for kh in range(1, KH):
            v = rv[:, kh:kh + h_span:SH, :]
            upd = v > bv                       # strict ">" -> first kh wins ties
            bv = jnp.where(upd, v, bv)
            bk = jnp.where(upd, rk[:, kh:kh + h_span:SH, :], bk)
            bh = jnp.where(upd, jnp.int32(kh), bh)

        # Flat row-major index into the (H, W) plane, computed once.
        # Axis 0 of the block is ow (W), axis 1 is oh (H).
        row_base = jax.lax.broadcasted_iota(jnp.int32, (W_out, H_out, T), 1) * SH
        col_base = jax.lax.broadcasted_iota(jnp.int32, (W_out, H_out, T), 0) * SW
        idx = (row_base + bh) * W + (col_base + bk)

        out_ref[...] = bv.astype(out_ref.dtype)
        idx_ref[...] = idx

    return kernel


def _tpu_vmem_capacity_bytes():
    """Physical VMEM per TensorCore; conservative default if query fails."""
    try:
        info = pltpu.get_tpu_info()
        cap = getattr(info, "vmem_capacity_bytes", None)
        if cap:
            return int(cap)
    except Exception:
        pass
    return 64 * 1024 * 1024  # conservative: v7x per-TC VMEM


def max_pool2d_with_indices(x, kernel_size=(4, 4), stride=(1, 1)):
    """x: (N, C, H, W) float32 -> (values, indices) both (N, C, H_out, W_out).

    Matches aten.max_pool2d_with_indices(kernel_size, stride, padding=0,
    dilation=1); indices are int32 (PyTorch uses int64).
    """
    N, C, H, W = x.shape
    KH, KW = kernel_size
    SH, SW = stride
    H_out = (H - KH) // SH + 1
    W_out = (W - KW) // SW + 1
    assert H_out > 0 and W_out > 0

    NC = N * C
    # Channels-last, W-leading layout: lanes = NC, sublanes = H, leading = W.
    xcl = x.reshape(NC, H, W).transpose(2, 1, 0)  # (W, H, NC)

    # ---- Per-channel VMEM footprint (bytes), including intermediates.
    per_ch = (2 * H * W * 4                    # double-buffered input block
              + 2 * H_out * W_out * (4 + 4)    # double-buffered value+index outs
              + 2 * W_out * H * 4              # rv + rk intermediates
              + 6 * H_out * W_out * 4)         # bv/bk/bh + iota/index temporaries

    # ---- Per-generation VMEM targets.
    vmem_cap = _tpu_vmem_capacity_bytes()
    if vmem_cap >= 96 * 1024 * 1024:           # v5e / v6e: 128 MiB physical VMEM
        vmem_limit = 64 * 1024 * 1024
        lane_cap = 2048
    else:                                      # v7x: 64 MiB per TensorCore
        vmem_limit = 32 * 1024 * 1024
        lane_cap = 512
    budget = (vmem_limit * 3) // 4             # headroom for pipeline/compiler

    # ---- Lane (NC) tiling.
    if NC < 256:
        # Small channel count: one full-extent lane block (no 128-divisibility
        # requirement when the block equals the full array dim).  Splitting a
        # tiny NC would only add masked stores and per-step overhead.
        tile_nc = NC
        nc_pad = NC
    else:
        max_tile = min(lane_cap, max(128, (budget // per_ch) // 128 * 128))
        # Force >= 2 lane tiles so the "parallel" axis shards across both v7x
        # TensorCores (negligible cost on single-TC v5e/v6e).
        half = max(128, (((NC + 1) // 2) // 128) * 128)
        tile_nc = min(max_tile, half)
        nc_pad = -(-NC // tile_nc) * tile_nc
        if nc_pad != NC:
            xcl = jnp.pad(xcl, ((0, 0), (0, 0), (0, nc_pad - NC)))
    grid = (nc_pad // tile_nc,)

    # If even the chosen tile exceeds the per-generation limit (huge planes),
    # raise the scoped limit rather than failing outright.
    need = per_ch * tile_nc + (4 << 20)
    if need > vmem_limit:
        vmem_limit = min(need, max(vmem_cap - (8 << 20), vmem_limit))

    kernel = _make_maxpool_kernel(H, W, H_out, W_out, KH, KW, SH, SW)

    vals, idxs = pl.pallas_call(
        kernel,
        grid=grid,
        in_specs=[pl.BlockSpec((W, H, tile_nc), lambda i: (0, 0, i))],
        out_specs=(
            pl.BlockSpec((W_out, H_out, tile_nc), lambda i: (0, 0, i)),
            pl.BlockSpec((W_out, H_out, tile_nc), lambda i: (0, 0, i)),
        ),
        out_shape=(
            jax.ShapeDtypeStruct((W_out, H_out, nc_pad), x.dtype),
            jax.ShapeDtypeStruct((W_out, H_out, nc_pad), jnp.int32),
        ),
        compiler_params=pltpu.CompilerParams(
            dimension_semantics=("parallel",),
            vmem_limit_bytes=int(vmem_limit),
            allow_input_fusion=[True],  # let XLA fuse the transpose/pad into the input DMA
        ),
    )(xcl)

    vals = vals[:, :, :NC].transpose(2, 1, 0).reshape(N, C, H_out, W_out)
    idxs = idxs[:, :, :NC].transpose(2, 1, 0).reshape(N, C, H_out, W_out)
    return vals, idxs


def _reference_maxpool(x_np, kernel_size=(4, 4), stride=(1, 1)):
    """Pure NumPy reference reproducing aten.max_pool2d_with_indices."""
    N, C, H, W = x_np.shape
    KH, KW = kernel_size
    SH, SW = stride
    H_out = (H - KH) // SH + 1
    W_out = (W - KW) // SW + 1
    vals = np.empty((N, C, H_out, W_out), dtype=x_np.dtype)
    idxs = np.empty((N, C, H_out, W_out), dtype=np.int64)
    for n in range(N):
        for c in range(C):
            for oh in range(H_out):
                for ow in range(W_out):
                    h0, w0 = oh * SH, ow * SW
                    win = x_np[n, c, h0:h0 + KH, w0:w0 + KW]
                    flat = win.reshape(-1)
                    a = int(np.argmax(flat))  # first occurrence (row-major)
                    kh, kw = divmod(a, KW)
                    vals[n, c, oh, ow] = flat[a]
                    idxs[n, c, oh, ow] = (h0 + kh) * W + (w0 + kw)
    return vals, idxs


def _check(x, kernel_size=(4, 4), stride=(1, 1)):
    vals, idxs = max_pool2d_with_indices(x, kernel_size, stride)
    vals = jax.block_until_ready(vals)
    idxs = jax.block_until_ready(idxs)
    rv, ri = _reference_maxpool(np.asarray(x), kernel_size, stride)
    np.testing.assert_allclose(np.asarray(vals), rv, rtol=1e-6, atol=1e-6)
    np.testing.assert_array_equal(np.asarray(idxs).astype(np.int64), ri)


if __name__ == "__main__":
    key = jax.random.PRNGKey(0)
    k0, k1, k2 = jax.random.split(key, 3)

    # "Full size kernel": spatial size == kernel size (4x4) -> 1x1 output.
    x = jax.random.normal(k0, (2, 4, 4, 4), dtype=jnp.float32)
    _check(x, (4, 4), (1, 1))

    # Larger spatial extent: exercises H_out, W_out > 1 path.
    x2 = jax.random.normal(k1, (2, 4, 16, 16), dtype=jnp.float32)
    _check(x2, (4, 4), (1, 1))

    # Tie-heavy, tiled-NC case (NC = 320 -> two+ lane tiles + padding path);
    # quantized values create many equal maxima to exercise the tie-break.
    x3 = jnp.floor(jax.random.uniform(k2, (2, 160, 6, 6), dtype=jnp.float32) * 3.0)
    _check(x3, (4, 4), (1, 1))

    print("KERNEL_OK")
</pallas_src>

<mosaic_0001>
module attributes {stable_mosaic.version = 11 : i64} {
  func.func @kernel(%arg0: i32, %arg1: memref<4x4x8xf32, #tpu.memory_space<vmem>>, %arg2: memref<1x1x8xf32, #tpu.memory_space<vmem>>, %arg3: memref<1x1x8xi32, #tpu.memory_space<vmem>>) attributes {dimension_semantics = [#tpu.dimension_semantics<parallel>], iteration_bounds = array<i64: 1>, scalar_prefetch = 0 : i64, scratch_operands = 0 : i64, tpu.core_type = #tpu.core_type<tc>, window_params = [{transform_indices = @transform_0, window_bounds = array<i64: 4, 4, 8>}, {transform_indices = @transform_1, window_bounds = array<i64: 1, 1, 8>}, {transform_indices = @transform_2, window_bounds = array<i64: 1, 1, 8>}]} {
    %c0 = arith.constant 0 : index
    %c0_0 = arith.constant 0 : index
    %c0_1 = arith.constant 0 : index
    %0 = vector.load %arg1[%c0, %c0_0, %c0_1] : memref<4x4x8xf32, #tpu.memory_space<vmem>>, vector<4x4x8xf32>
    %1 = vector.extract_strided_slice %0 {offsets = [0, 0, 0], sizes = [1, 4, 8], strides = [1, 1, 1]} : vector<4x4x8xf32> to vector<1x4x8xf32>
    %c0_i32 = arith.constant 0 : i32
    %2 = vector.broadcast %c0_i32 : i32 to vector<1x4x8xi32>
    %3 = vector.extract_strided_slice %0 {offsets = [1, 0, 0], sizes = [1, 4, 8], strides = [1, 1, 1]} : vector<4x4x8xf32> to vector<1x4x8xf32>
    %4 = arith.cmpf ogt, %3, %1 : vector<1x4x8xf32>
    %5 = arith.select %4, %3, %1 : vector<1x4x8xi1>, vector<1x4x8xf32>
    %c1_i32 = arith.constant 1 : i32
    %6 = vector.broadcast %c1_i32 : i32 to vector<1x4x8xi32>
    %7 = arith.select %4, %6, %2 : vector<1x4x8xi1>, vector<1x4x8xi32>
    %8 = vector.extract_strided_slice %0 {offsets = [2, 0, 0], sizes = [1, 4, 8], strides = [1, 1, 1]} : vector<4x4x8xf32> to vector<1x4x8xf32>
    %9 = arith.cmpf ogt, %8, %5 : vector<1x4x8xf32>
    %10 = arith.select %9, %8, %5 : vector<1x4x8xi1>, vector<1x4x8xf32>
    %c2_i32 = arith.constant 2 : i32
    %11 = vector.broadcast %c2_i32 : i32 to vector<1x4x8xi32>
    %12 = arith.select %9, %11, %7 : vector<1x4x8xi1>, vector<1x4x8xi32>
    %13 = vector.extract_strided_slice %0 {offsets = [3, 0, 0], sizes = [1, 4, 8], strides = [1, 1, 1]} : vector<4x4x8xf32> to vector<1x4x8xf32>
    %14 = arith.cmpf ogt, %13, %10 : vector<1x4x8xf32>
    %15 = arith.select %14, %13, %10 : vector<1x4x8xi1>, vector<1x4x8xf32>
    %c3_i32 = arith.constant 3 : i32
    %16 = vector.broadcast %c3_i32 : i32 to vector<1x4x8xi32>
    %17 = arith.select %14, %16, %12 : vector<1x4x8xi1>, vector<1x4x8xi32>
    %18 = vector.extract_strided_slice %15 {offsets = [0, 0, 0], sizes = [1, 1, 8], strides = [1, 1, 1]} : vector<1x4x8xf32> to vector<1x1x8xf32>
    %19 = vector.extract_strided_slice %17 {offsets = [0, 0, 0], sizes = [1, 1, 8], strides = [1, 1, 1]} : vector<1x4x8xi32> to vector<1x1x8xi32>
    %c0_i32_2 = arith.constant 0 : i32
    %20 = vector.broadcast %c0_i32_2 : i32 to vector<1x1x8xi32>
    %21 = vector.extract_strided_slice %15 {offsets = [0, 1, 0], sizes = [1, 1, 8], strides = [1, 1, 1]} : vector<1x4x8xf32> to vector<1x1x8xf32>
    %22 = arith.cmpf ogt, %21, %18 : vector<1x1x8xf32>
    %23 = arith.select %22, %21, %18 : vector<1x1x8xi1>, vector<1x1x8xf32>
    %24 = vector.extract_strided_slice %17 {offsets = [0, 1, 0], sizes = [1, 1, 8], strides = [1, 1, 1]} : vector<1x4x8xi32> to vector<1x1x8xi32>
    %25 = arith.select %22, %24, %19 : vector<1x1x8xi1>, vector<1x1x8xi32>
    %c1_i32_3 = arith.constant 1 : i32
    %26 = vector.broadcast %c1_i32_3 : i32 to vector<1x1x8xi32>
    %27 = arith.select %22, %26, %20 : vector<1x1x8xi1>, vector<1x1x8xi32>
    %28 = vector.extract_strided_slice %15 {offsets = [0, 2, 0], sizes = [1, 1, 8], strides = [1, 1, 1]} : vector<1x4x8xf32> to vector<1x1x8xf32>
    %29 = arith.cmpf ogt, %28, %23 : vector<1x1x8xf32>
    %30 = arith.select %29, %28, %23 : vector<1x1x8xi1>, vector<1x1x8xf32>
    %31 = vector.extract_strided_slice %17 {offsets = [0, 2, 0], sizes = [1, 1, 8], strides = [1, 1, 1]} : vector<1x4x8xi32> to vector<1x1x8xi32>
    %32 = arith.select %29, %31, %25 : vector<1x1x8xi1>, vector<1x1x8xi32>
    %c2_i32_4 = arith.constant 2 : i32
    %33 = vector.broadcast %c2_i32_4 : i32 to vector<1x1x8xi32>
    %34 = arith.select %29, %33, %27 : vector<1x1x8xi1>, vector<1x1x8xi32>
    %35 = vector.extract_strided_slice %15 {offsets = [0, 3, 0], sizes = [1, 1, 8], strides = [1, 1, 1]} : vector<1x4x8xf32> to vector<1x1x8xf32>
    %36 = arith.cmpf ogt, %35, %30 : vector<1x1x8xf32>
    %37 = arith.select %36, %35, %30 : vector<1x1x8xi1>, vector<1x1x8xf32>
    %38 = vector.extract_strided_slice %17 {offsets = [0, 3, 0], sizes = [1, 1, 8], strides = [1, 1, 1]} : vector<1x4x8xi32> to vector<1x1x8xi32>
    %39 = arith.select %36, %38, %32 : vector<1x1x8xi1>, vector<1x1x8xi32>
    %c3_i32_5 = arith.constant 3 : i32
    %40 = vector.broadcast %c3_i32_5 : i32 to vector<1x1x8xi32>
    %41 = arith.select %36, %40, %34 : vector<1x1x8xi1>, vector<1x1x8xi32>
    %42 = tpu.iota {dimensions = array<i32: 1>} : vector<1x1x8xi32>
    %c1_i32_6 = arith.constant 1 : i32
    %43 = vector.broadcast %c1_i32_6 : i32 to vector<1x1x8xi32>
    %44 = arith.muli %42, %43 : vector<1x1x8xi32>
    %45 = tpu.iota {dimensions = array<i32: 0>} : vector<1x1x8xi32>
    %c1_i32_7 = arith.constant 1 : i32
    %46 = vector.broadcast %c1_i32_7 : i32 to vector<1x1x8xi32>
    %47 = arith.muli %45, %46 : vector<1x1x8xi32>
    %48 = arith.addi %44, %41 : vector<1x1x8xi32>
    %c4_i32 = arith.constant 4 : i32
    %49 = vector.broadcast %c4_i32 : i32 to vector<1x1x8xi32>
    %50 = arith.muli %48, %49 : vector<1x1x8xi32>
    %51 = arith.addi %47, %39 : vector<1x1x8xi32>
    %52 = arith.addi %50, %51 : vector<1x1x8xi32>
    %c0_8 = arith.constant 0 : index
    %c0_9 = arith.constant 0 : index
    %c0_10 = arith.constant 0 : index
    %53 = vector.load %arg2[%c0_8, %c0_9, %c0_10] : memref<1x1x8xf32, #tpu.memory_space<vmem>>, vector<1x1x8xf32>
    tpu.vector_store %arg2[%c0_8, %c0_9, %c0_10], %37 {strides = array<i32>} : memref<1x1x8xf32, #tpu.memory_space<vmem>>, vector<1x1x8xf32>,
    %c0_11 = arith.constant 0 : index
    %c0_12 = arith.constant 0 : index
    %c0_13 = arith.constant 0 : index
    %54 = vector.load %arg3[%c0_11, %c0_12, %c0_13] : memref<1x1x8xi32, #tpu.memory_space<vmem>>, vector<1x1x8xi32>
    tpu.vector_store %arg3[%c0_11, %c0_12, %c0_13], %52 {strides = array<i32>} : memref<1x1x8xi32, #tpu.memory_space<vmem>>, vector<1x1x8xi32>,
    return
  }
  func.func @transform_0(%arg0: i32) -> (i32, i32, i32) {
    %c0_i32 = arith.constant 0 : i32
    %c0_i32_0 = arith.constant 0 : i32
    %c0_i32_1 = arith.constant 0 : i32
    return %c0_i32, %c0_i32_0, %arg0 : i32, i32, i32
  }
  func.func @transform_1(%arg0: i32) -> (i32, i32, i32) {
    %c0_i32 = arith.constant 0 : i32
    %c0_i32_0 = arith.constant 0 : i32
    %c0_i32_1 = arith.constant 0 : i32
    return %c0_i32, %c0_i32_0, %arg0 : i32, i32, i32
  }
  func.func @transform_2(%arg0: i32) -> (i32, i32, i32) {
    %c0_i32 = arith.constant 0 : i32
    %c0_i32_0 = arith.constant 0 : i32
    %c0_i32_1 = arith.constant 0 : i32
    return %c0_i32, %c0_i32_0, %arg0 : i32, i32, i32
  }
}

</mosaic_0001>

<bundles_post_ra>
// kernel: tpu_custom_call.1
= control target key start
LH: loop header
LB: loop body
LE: loop exit
PB: predicated region body
PF: predicated region fallthrough
CT: control target
= control target key end

     0   :  { %8 = vsyncpa [#allocation3], 0  ;;  %s240_s0 = inlined_call_operand.hbm [shape: f32[4,4,8], index: 0, kind: input, shape index: {}]   ;;  %s241_s1 = inlined_call_operand.hbm [shape: f32[1,1,8], index: 1, kind: output, shape index: {0}]   ;;  %s242_s2 = inlined_call_operand.hbm [shape: s32[1,1,8], index: 2, kind: output, shape index: {1}]  }
   0x1   :  { %9 = vsyncpa [#allocation4], 0 }
   0x2   :  { %10 = vsyncpa [#allocation7], 0  ;;  %s183_s9 = smov [#allocation2]   ;;  %s111_s13 = scalar_lea.hbm %s240_s0, 256 }
   0x3   :  { %s16_s10 = sshll.u32 %s183_s9, 4  ;;  %p112_p0 = scmp.ne.s32.totalorder %s240_s0, %s111_s13  ;;  %s17_s10 = int_to_ptr.vmem [resolvable:$true] %s16_s10 }
   0x4   :  { %p115_p1 = scmp.lt.u32.totalorder %s111_s13, %s240_s0 }
   0x6   :  { %p117_p2 = pnand %p115_p1, %p112_p0 }
   0x8   :  { %120 = shalt.err (!%p117_p2)
}
   0x9   :  { %s121_s18 = scalar_lea.vmem %s17_s10, 256  ;;  %p126_p4 = scmp.lt.s32.totalorder %s17_s10, %s17_s10 }
   0xa   :  { %p122_p3 = scmp.ne.s32.totalorder %s17_s10, %s121_s18  ;;  %p127_p5 = scmp.lt.s32.totalorder %s121_s18, %s121_s18 }
   0xc   :  { %p128_p6 = por %p127_p5, %p126_p4 }
   0xe   :  { %p129_p7 = pnand %p128_p6, %p122_p3 }
  0x10   :  { %132 = shalt.err (!%p129_p7)
}
  0x11   :  { %s184_s19 = smov 64   ;;  %s185_s20 = smov 4  }
  0x12   :  { %22 = dma.hbm_to_vmem [thread:$0]  %s240_s0, 256, %s17_s10, [#allocation3], %s184_s19, %s184_s19, %s185_s20  }
  0x13   :  { %177 = dma.done.wait [#allocation3], 256  }
  0x14   :  { %178 = vsyncadd [#allocation3], 4294967040  ;;  %v26_v0 = vld [vmem:[#allocation2] sm:$0xf]  ;;  %v27_v1 = vld [vmem:[#allocation2 + $0x4] sm:$0xf]  ;;  %v65_v19 = vlaneseq }
  0x15   :  { %v28_v2 = vld [vmem:[#allocation2 + $0x8] sm:$0xf]  ;;  %vm30_vm0 = vcmp.gt.f32.partialorder %v27_v1, %v26_v0  ;;  %v29_v3 = vld [vmem:[#allocation2 + $0xc] sm:$0xf]  ;;  %v186_v5 = vmov 0   ;;  %s187_s0 = smov [#allocation5]  }
  0x16   :  { %v31_v4 = vsel %vm30_vm0, %v27_v1, %v26_v0  ;;  %v32_v6 = vsel %vm30_vm0, 1, %v186_v5  ;;  %s82_s23 = sshll.u32 %s187_s0, 4  ;;  %vm72_vm5 = vcmask 60419   ;;  %v66_v26 = vshrl.u32 %v65_v19, 7  ;;  %s83_s23 = int_to_ptr.vmem [resolvable:$true] %s82_s23 }
  0x17   :  { %vm33_vm1 = vcmp.gt.f32.partialorder %v28_v2, %v31_v4  ;;  %s133_s24 = scalar_lea.vmem %s83_s23, 16  ;;  %s137_s25 = scalar_lea.vmem %s83_s23, 32 }
  0x18   :  { %v34_v7 = vsel %vm33_vm1, %v28_v2, %v31_v4  ;;  %v35_v8 = vsel %vm33_vm1, 2, %v32_v6  ;;  %p134_p8 = scmp.ne.s32.totalorder %s83_s23, %s133_s24  ;;  %p138_p9 = scmp.lt.s32.totalorder %s83_s23, %s83_s23 }
  0x19   :  { %vm36_vm2 = vcmp.gt.f32.partialorder %v29_v3, %v34_v7  ;;  %p139_p10 = scmp.lt.s32.totalorder %s137_s25, %s133_s24 }
  0x1a   :  { %v37_v9 = vsel %vm36_vm2, %v29_v3, %v34_v7  ;;  %v38_v10 = vsel %vm36_vm2, 3, %v35_v8 }
  0x1b   :  { %v40_v11 = vrot.slane %v37_v9, 7  ;;  %v44_v12 = vrot.slane %v38_v10, 7  ;;  %p140_p11 = por %p139_p10, %p138_p9 }
  0x1d   :  { %vm42_vm3 = vcmp.gt.f32.partialorder %v37_v9, %v40_v11  ;;  %p141_p12 = pnand %p140_p11, %p134_p8 }
  0x1e   :  { %v43_v13 = vsel %vm42_vm3, %v37_v9, %v40_v11  ;;  %v46_v14 = vsel %vm42_vm3, 1, %v186_v5  ;;  %v45_v15 = vsel %vm42_vm3, %v38_v10, %v44_v12 }
  0x1f   :  { %v48_v16 = vrot.slane %v43_v13, 7  ;;  %v54_v17 = vrot.slane %v46_v14, 7  ;;  %v52_v18 = vrot.slane %v45_v15, 7 }
  0x21   :  { %vm50_vm4 = vcmp.gt.f32.partialorder %v37_v9, %v48_v16 }
  0x22   :  { %v51_v20 = vsel %vm50_vm4, %v37_v9, %v48_v16  ;;  %v55_v21 = vsel %vm50_vm4, 2, %v54_v17  ;;  %v53_v22 = vsel %vm50_vm4, %v38_v10, %v52_v18 }
  0x23   :  { %v57_v23 = vrot.slane %v51_v20, 7  ;;  %v63_v24 = vrot.slane %v55_v21, 7  ;;  %v61_v25 = vrot.slane %v53_v22, 7 }
  0x25   :  { %vm59_vm6 = vcmp.gt.f32.partialorder %v37_v9, %v57_v23 }
  0x26   :  { %v60_v27 = vsel %vm59_vm6, %v37_v9, %v57_v23  ;;  %v64_v28 = vsel %vm59_vm6, 3, %v63_v24  ;;  %v62_v29 = vsel %vm59_vm6, %v38_v10, %v61_v25 }
  0x27   :  { %v67_v30 = vrot.slane %v64_v28, 3  ;;  %73 = vst.msk [vmem:[#allocation5 - $0x3] sm:$0x8] %vm72_vm5, %v60_v27 }
  0x28   :  { %144 = shalt.err (!%p141_p12)
}
  0x29   :  { %s145_s28 = scalar_lea.hbm %s241_s1, 16 }
  0x2a   :  { %p146_p13 = scmp.ne.s32.totalorder %s241_s1, %s145_s28  ;;  %p149_p0 = scmp.lt.u32.totalorder %s145_s28, %s241_s1 }
  0x2c   :  { %p151_p1 = pnand %p149_p0, %p146_p13 }
  0x2e   :  { %154 = shalt.err (!%p151_p1)
}
  0x2f   :  { %85 = dma.vmem_to_hbm [thread:$0]  %s83_s23, 16, %s241_s1, [#allocation4]   ;;  %v68_v31 = vadd.s32 %v67_v30, %v66_v26  ;;  %v70_v32 = vrot.slane %v62_v29, 3  ;;  %vm74_vm7 = vcmask 57344  }
  0x30   :  { %s188_s7 = smov [#allocation6]  }
  0x31   :  { %s92_s8 = sshll.u32 %s188_s7, 4  ;;  %v69_v33 = vmul.u32 4, %v68_v31  ;;  %s93_s8 = int_to_ptr.vmem [resolvable:$true] %s92_s8 }
  0x32   :  { %s155_s9 = scalar_lea.vmem %s93_s8, 16  ;;  %s159_s10 = scalar_lea.vmem %s93_s8, 32 }
  0x33   :  { %v71_v34 = vadd.s32 %v70_v32, %v69_v33  ;;  %p156_p2 = scmp.ne.s32.totalorder %s93_s8, %s155_s9  ;;  %p160_p3 = scmp.lt.s32.totalorder %s93_s8, %s93_s8 }
  0x34   :  { %p161_p4 = scmp.lt.s32.totalorder %s159_s10, %s155_s9 }
  0x35   :  { %75 = vst.msk [vmem:[#allocation6] sm:$0x1] %vm74_vm7, %v71_v34 }
  0x36   :  { %p162_p5 = por %p161_p4, %p160_p3 }
  0x38   :  { %p163_p6 = pnand %p162_p5, %p156_p2 }
  0x3a   :  { %166 = shalt.err (!%p163_p6)
}
  0x3b   :  { %s167_s1 = scalar_lea.hbm %s242_s2, 16 }
  0x3c   :  { %p168_p7 = scmp.ne.s32.totalorder %s242_s2, %s167_s1  ;;  %p171_p8 = scmp.lt.u32.totalorder %s167_s1, %s242_s2 }
  0x3e   :  { %p173_p9 = pnand %p171_p8, %p168_p7 }
  0x40   :  { %176 = shalt.err (!%p173_p9)
}
  0x41   :  { %95 = dma.vmem_to_hbm [thread:$0]  %s93_s8, 16, %s242_s2, [#allocation7]  }
  0x42   :  { %179 = dma.done.wait [#allocation4], 16  }
  0x43   :  { %180 = vsyncadd [#allocation4], 4294967280 }
  0x44   :  { %181 = dma.done.wait [#allocation7], 16  }
  0x45   :  { %182 = vsyncadd [#allocation7], 4294967280 }
  0x46   :  { %102 = vsyncpa [#allocation3], 1 }
  0x47   :  { %103 = vsyncpa [#allocation4], 1 }
  0x48   :  { %104 = vsyncpa [#allocation7], 1 }

</bundles_post_ra>
